<compile_context>
chip_gen: v6e
topology: v6e:2x2x1
jax: 0.10.0
libtpu: 0.0.40
codegen_flags: <defaults>
</compile_context>

<pallas_src>
import jax
import jax.numpy as jnp
import numpy as np
from jax.experimental import pallas as pl
from jax.experimental.pallas import tpu as pltpu

# ---------------------------------------------------------------------------
# Problem sizes (small, consistent with the module's forward)
# ---------------------------------------------------------------------------
B = 2            # batch
C_IN = 8         # in_channels
C_BN = 8         # bottleneck_channels
F = 8            # num_filters
L = 32           # seq_len
KSIZES = (9, 19, 39)
KMAX = max(KSIZES)          # 39
PAD = KMAX // 2             # 19
EPS = 1e-5

# Lane-dense layout constants (batch folded into the lane axis).
SEG = L + PAD               # stride between batch segments in padded y  (51)
YPAD_W = PAD + B * SEG      # padded bottleneck width                    (121)
PATCH_W = (B - 1) * SEG + L # patch-matrix width (valid conv columns)    (83)
PSEG = L + 1                # stride between batch segments for maxpool  (33)
XPOOL_W = 1 + B * PSEG      # padded maxpool input width                 (67)
POOL_W = (B - 1) * PSEG + L # pooled width (valid pool columns)          (65)


# ---------------------------------------------------------------------------
# Pallas kernel: whole InceptionBlock forward, one grid point, everything VMEM.
# ---------------------------------------------------------------------------
def inception_block_kernel(x_ref, wb_ref, wf_ref, w4_ref, b4_ref,
                           gamma_ref, beta_ref, o_ref):
    x = x_ref[...]            # (C_IN, B*L)   lane-dense input
    wb = wb_ref[...]          # (C_BN, C_IN)
    wf = wf_ref[...]          # (3F, KMAX*C_BN)  fused conv weight, tap-major
    w4 = w4_ref[...]          # (F, C_IN)
    b4 = b4_ref[...]          # (F, 1)
    gamma = gamma_ref[...]    # (4F, 1)
    beta = beta_ref[...]      # (4F, 1)

    # ---- bottleneck 1x1 conv (no bias) + relu: one MXU matmul over B*L lanes --
    y = jnp.maximum(jnp.dot(wb, x, preferred_element_type=jnp.float32), 0.0)

    # ---- one shared zero-padded buffer (interior pads shared between batches) -
    zpad = jnp.zeros((C_BN, PAD), jnp.float32)
    pieces = [zpad]
    for b in range(B):
        pieces.append(y[:, b * L:(b + 1) * L])
        pieces.append(zpad)
    ypad = jnp.concatenate(pieces, axis=1)                  # (C_BN, YPAD_W)

    # ---- im2col patch matrix: row k*C_BN + c  ==  ypad[c, j + k] --------------
    patches = jnp.concatenate(
        [ypad[:, k:k + PATCH_W] for k in range(KMAX)], axis=0)   # (KMAX*C_BN, PATCH_W)

    # ---- conv1 + conv2 + conv3 fused into ONE matmul (contraction depth 312) --
    conv_full = jnp.dot(wf, patches, preferred_element_type=jnp.float32)  # (3F, PATCH_W)
    x123 = jnp.maximum(
        jnp.concatenate([conv_full[:, b * SEG:b * SEG + L] for b in range(B)],
                        axis=1), 0.0)                        # (3F, B*L)

    # ---- maxpool(k=3, s=1, p=1) on the ORIGINAL input (lane-dense) ------------
    ninf = jnp.full((C_IN, 1), -jnp.inf, jnp.float32)
    pp = [ninf]
    for b in range(B):
        pp.append(x[:, b * L:(b + 1) * L])
        pp.append(ninf)
    xp = jnp.concatenate(pp, axis=1)                         # (C_IN, XPOOL_W)
    pooled_full = jnp.maximum(
        jnp.maximum(xp[:, 0:POOL_W], xp[:, 1:POOL_W + 1]), xp[:, 2:POOL_W + 2])
    pooled = jnp.concatenate(
        [pooled_full[:, b * PSEG:b * PSEG + L] for b in range(B)], axis=1)  # (C_IN, B*L)

    # ---- conv4 1x1 (with bias) + relu ----------------------------------------
    x4 = jnp.maximum(
        jnp.dot(w4, pooled, preferred_element_type=jnp.float32) + b4, 0.0)  # (F, B*L)

    cat = jnp.concatenate([x123, x4], axis=0)                # (4F, B*L)

    # ---- BatchNorm1d (training-mode batch stats over (batch, length)) + relu --
    mean = jnp.mean(cat, axis=1, keepdims=True)              # (4F, 1)
    var = jnp.mean((cat - mean) ** 2, axis=1, keepdims=True) # biased variance
    inv_std = jax.lax.rsqrt(var + EPS)
    scale = gamma * inv_std                                  # hoisted affine
    shift = beta - mean * scale
    o_ref[...] = jnp.maximum(cat * scale + shift, 0.0)       # one dense store


# ---------------------------------------------------------------------------
# Wrapper: layout plumbing + weight preprocessing, then a single pallas_call.
# ---------------------------------------------------------------------------
def _fuse_conv_weights(ws):
    """Embed each (F, C, K) conv weight centered in KMAX taps and flatten to
    (F, KMAX*C) tap-major rows; stack the branches along the filter axis."""
    rows = []
    for w in ws:
        fo, c, k = w.shape
        off = PAD - k // 2                       # center inside the 39-tap window
        wpad = jnp.pad(w, ((0, 0), (0, 0), (off, KMAX - k - off)))   # (F, C, KMAX)
        rows.append(jnp.transpose(wpad, (0, 2, 1)).reshape(fo, KMAX * c))
    return jnp.concatenate(rows, axis=0)         # (3F, KMAX*C_BN)


def inception_block(x, wb, w1, w2, w3, w4, b4, gamma, beta):
    bb, cin, ll = x.shape
    # Lane-dense: fold batch into the length (lane) axis.
    x_flat = jnp.transpose(x, (1, 0, 2)).reshape(cin, bb * ll)
    wf = _fuse_conv_weights((w1, w2, w3))

    vmem = pl.BlockSpec(memory_space=pltpu.MemorySpace.VMEM)
    out_flat = pl.pallas_call(
        inception_block_kernel,
        out_shape=jax.ShapeDtypeStruct((4 * F, bb * ll), jnp.float32),
        in_specs=[vmem] * 7,
        out_specs=vmem,
    )(x_flat, wb, wf, w4, b4, gamma, beta)

    # Back to (B, 4F, L) NCL layout.
    return jnp.transpose(out_flat.reshape(4 * F, bb, ll), (1, 0, 2))


# ---------------------------------------------------------------------------
# Pure-JAX reference (XLA conv / reduce_window) for correctness checking.
# ---------------------------------------------------------------------------
def reference(x, wb, w1, w2, w3, w4, b4, gamma, beta):
    def conv1d(z, w, pad):
        return jax.lax.conv_general_dilated(
            z, w, window_strides=(1,), padding=[(pad, pad)],
            dimension_numbers=("NCH", "OIH", "NCH"))

    y = jax.nn.relu(conv1d(x, wb[:, :, None], 0))
    x1 = jax.nn.relu(conv1d(y, w1, KSIZES[0] // 2))
    x2 = jax.nn.relu(conv1d(y, w2, KSIZES[1] // 2))
    x3 = jax.nn.relu(conv1d(y, w3, KSIZES[2] // 2))
    pooled = jax.lax.reduce_window(
        x, -jnp.inf, jax.lax.max, window_dimensions=(1, 1, 3),
        window_strides=(1, 1, 1), padding=((0, 0), (0, 0), (1, 1)))
    x4 = jax.nn.relu(conv1d(pooled, w4[:, :, None], 0) + b4[None, :, :])
    xc = jnp.concatenate([x1, x2, x3, x4], axis=1)          # (B, 4F, L)
    mean = xc.mean(axis=(0, 2), keepdims=True)
    var = ((xc - mean) ** 2).mean(axis=(0, 2), keepdims=True)
    xn = (xc - mean) / jnp.sqrt(var + EPS)
    return jax.nn.relu(gamma[None] * xn + beta[None])


# ---------------------------------------------------------------------------
# Main
# ---------------------------------------------------------------------------
if __name__ == "__main__":
    key = jax.random.PRNGKey(0)
    keys = jax.random.split(key, 9)

    x = jax.random.normal(keys[0], (B, C_IN, L), jnp.float32)

    # Deterministic synthetic parameters (shapes from the module's __init__).
    wb = 0.1 * jax.random.normal(keys[1], (C_BN, C_IN), jnp.float32)          # bottleneck 1x1
    w1 = 0.1 * jax.random.normal(keys[2], (F, C_BN, KSIZES[0]), jnp.float32)  # conv1
    w2 = 0.1 * jax.random.normal(keys[3], (F, C_BN, KSIZES[1]), jnp.float32)  # conv2
    w3 = 0.1 * jax.random.normal(keys[4], (F, C_BN, KSIZES[2]), jnp.float32)  # conv3
    w4 = 0.1 * jax.random.normal(keys[5], (F, C_IN), jnp.float32)             # conv4 1x1
    b4 = 0.1 * jax.random.normal(keys[6], (F, 1), jnp.float32)                # conv4 bias
    gamma = 1.0 + 0.1 * jax.random.normal(keys[7], (4 * F, 1), jnp.float32)   # BN weight
    beta = 0.1 * jax.random.normal(keys[8], (4 * F, 1), jnp.float32)          # BN bias

    out = inception_block(x, wb, w1, w2, w3, w4, b4, gamma, beta)
    out = jax.block_until_ready(out)

    ref = reference(x, wb, w1, w2, w3, w4, b4, gamma, beta)
    np.testing.assert_allclose(np.asarray(out), np.asarray(ref),
                               rtol=1e-4, atol=1e-4)

    print("KERNEL_OK")
</pallas_src>

<mosaic_0001>
module attributes {stable_mosaic.version = 11 : i64} {
  func.func @inception_block_kernel(%arg0: memref<8x64xf32, #tpu.memory_space<vmem>>, %arg1: memref<8x8xf32, #tpu.memory_space<vmem>>, %arg2: memref<24x312xf32, #tpu.memory_space<vmem>>, %arg3: memref<8x8xf32, #tpu.memory_space<vmem>>, %arg4: memref<8x1xf32, #tpu.memory_space<vmem>>, %arg5: memref<32x1xf32, #tpu.memory_space<vmem>>, %arg6: memref<32x1xf32, #tpu.memory_space<vmem>>, %arg7: memref<32x64xf32, #tpu.memory_space<vmem>>) attributes {dimension_semantics = [], scalar_prefetch = 0 : i64, scratch_operands = 0 : i64, tpu.core_type = #tpu.core_type<tc>} {
    %c0 = arith.constant 0 : index
    %c0_0 = arith.constant 0 : index
    %0 = vector.load %arg0[%c0, %c0_0] : memref<8x64xf32, #tpu.memory_space<vmem>>, vector<8x64xf32>
    %c0_1 = arith.constant 0 : index
    %c0_2 = arith.constant 0 : index
    %1 = vector.load %arg1[%c0_1, %c0_2] : memref<8x8xf32, #tpu.memory_space<vmem>>, vector<8x8xf32>
    %c0_3 = arith.constant 0 : index
    %c0_4 = arith.constant 0 : index
    %2 = vector.load %arg2[%c0_3, %c0_4] : memref<24x312xf32, #tpu.memory_space<vmem>>, vector<24x312xf32>
    %c0_5 = arith.constant 0 : index
    %c0_6 = arith.constant 0 : index
    %3 = vector.load %arg3[%c0_5, %c0_6] : memref<8x8xf32, #tpu.memory_space<vmem>>, vector<8x8xf32>
    %c0_7 = arith.constant 0 : index
    %c0_8 = arith.constant 0 : index
    %4 = vector.load %arg4[%c0_7, %c0_8] : memref<8x1xf32, #tpu.memory_space<vmem>>, vector<8x1xf32>
    %c0_9 = arith.constant 0 : index
    %c0_10 = arith.constant 0 : index
    %5 = vector.load %arg5[%c0_9, %c0_10] : memref<32x1xf32, #tpu.memory_space<vmem>>, vector<32x1xf32>
    %c0_11 = arith.constant 0 : index
    %c0_12 = arith.constant 0 : index
    %6 = vector.load %arg6[%c0_11, %c0_12] : memref<32x1xf32, #tpu.memory_space<vmem>>, vector<32x1xf32>
    %cst = arith.constant dense<0.000000e+00> : vector<8x64xf32>
    %7 = tpu.matmul %1, %0, %cst {dimension_numbers = #tpu.dot_dimension_numbers<[1], [0], [0], [1], [0, 0, 1, 1], [], []>} : vector<8x8xf32>, vector<8x64xf32>, vector<8x64xf32> -> vector<8x64xf32>
    %cst_13 = arith.constant 0.000000e+00 : f32
    %8 = vector.broadcast %cst_13 : f32 to vector<8x64xf32>
    %9 = arith.maximumf %7, %8 : vector<8x64xf32>
    %cst_14 = arith.constant 0.000000e+00 : f32
    %10 = vector.broadcast %cst_14 : f32 to vector<8x19xf32>
    %11 = vector.extract_strided_slice %9 {offsets = [0, 0], sizes = [8, 32], strides = [1, 1]} : vector<8x64xf32> to vector<8x32xf32>
    %12 = vector.extract_strided_slice %9 {offsets = [0, 32], sizes = [8, 32], strides = [1, 1]} : vector<8x64xf32> to vector<8x32xf32>
    %13 = tpu.concatenate %10, %11, %10, %12, %10 in 1 : vector<8x19xf32>, vector<8x32xf32>, vector<8x19xf32>, vector<8x32xf32>, vector<8x19xf32> -> vector<8x121xf32>
    %14 = vector.extract_strided_slice %13 {offsets = [0, 0], sizes = [8, 83], strides = [1, 1]} : vector<8x121xf32> to vector<8x83xf32>
    %15 = vector.extract_strided_slice %13 {offsets = [0, 1], sizes = [8, 83], strides = [1, 1]} : vector<8x121xf32> to vector<8x83xf32>
    %16 = vector.extract_strided_slice %13 {offsets = [0, 2], sizes = [8, 83], strides = [1, 1]} : vector<8x121xf32> to vector<8x83xf32>
    %17 = vector.extract_strided_slice %13 {offsets = [0, 3], sizes = [8, 83], strides = [1, 1]} : vector<8x121xf32> to vector<8x83xf32>
    %18 = vector.extract_strided_slice %13 {offsets = [0, 4], sizes = [8, 83], strides = [1, 1]} : vector<8x121xf32> to vector<8x83xf32>
    %19 = vector.extract_strided_slice %13 {offsets = [0, 5], sizes = [8, 83], strides = [1, 1]} : vector<8x121xf32> to vector<8x83xf32>
    %20 = vector.extract_strided_slice %13 {offsets = [0, 6], sizes = [8, 83], strides = [1, 1]} : vector<8x121xf32> to vector<8x83xf32>
    %21 = vector.extract_strided_slice %13 {offsets = [0, 7], sizes = [8, 83], strides = [1, 1]} : vector<8x121xf32> to vector<8x83xf32>
    %22 = vector.extract_strided_slice %13 {offsets = [0, 8], sizes = [8, 83], strides = [1, 1]} : vector<8x121xf32> to vector<8x83xf32>
    %23 = vector.extract_strided_slice %13 {offsets = [0, 9], sizes = [8, 83], strides = [1, 1]} : vector<8x121xf32> to vector<8x83xf32>
    %24 = vector.extract_strided_slice %13 {offsets = [0, 10], sizes = [8, 83], strides = [1, 1]} : vector<8x121xf32> to vector<8x83xf32>
    %25 = vector.extract_strided_slice %13 {offsets = [0, 11], sizes = [8, 83], strides = [1, 1]} : vector<8x121xf32> to vector<8x83xf32>
    %26 = vector.extract_strided_slice %13 {offsets = [0, 12], sizes = [8, 83], strides = [1, 1]} : vector<8x121xf32> to vector<8x83xf32>
    %27 = vector.extract_strided_slice %13 {offsets = [0, 13], sizes = [8, 83], strides = [1, 1]} : vector<8x121xf32> to vector<8x83xf32>
    %28 = vector.extract_strided_slice %13 {offsets = [0, 14], sizes = [8, 83], strides = [1, 1]} : vector<8x121xf32> to vector<8x83xf32>
    %29 = vector.extract_strided_slice %13 {offsets = [0, 15], sizes = [8, 83], strides = [1, 1]} : vector<8x121xf32> to vector<8x83xf32>
    %30 = vector.extract_strided_slice %13 {offsets = [0, 16], sizes = [8, 83], strides = [1, 1]} : vector<8x121xf32> to vector<8x83xf32>
    %31 = vector.extract_strided_slice %13 {offsets = [0, 17], sizes = [8, 83], strides = [1, 1]} : vector<8x121xf32> to vector<8x83xf32>
    %32 = vector.extract_strided_slice %13 {offsets = [0, 18], sizes = [8, 83], strides = [1, 1]} : vector<8x121xf32> to vector<8x83xf32>
    %33 = vector.extract_strided_slice %13 {offsets = [0, 19], sizes = [8, 83], strides = [1, 1]} : vector<8x121xf32> to vector<8x83xf32>
    %34 = vector.extract_strided_slice %13 {offsets = [0, 20], sizes = [8, 83], strides = [1, 1]} : vector<8x121xf32> to vector<8x83xf32>
    %35 = vector.extract_strided_slice %13 {offsets = [0, 21], sizes = [8, 83], strides = [1, 1]} : vector<8x121xf32> to vector<8x83xf32>
    %36 = vector.extract_strided_slice %13 {offsets = [0, 22], sizes = [8, 83], strides = [1, 1]} : vector<8x121xf32> to vector<8x83xf32>
    %37 = vector.extract_strided_slice %13 {offsets = [0, 23], sizes = [8, 83], strides = [1, 1]} : vector<8x121xf32> to vector<8x83xf32>
    %38 = vector.extract_strided_slice %13 {offsets = [0, 24], sizes = [8, 83], strides = [1, 1]} : vector<8x121xf32> to vector<8x83xf32>
    %39 = vector.extract_strided_slice %13 {offsets = [0, 25], sizes = [8, 83], strides = [1, 1]} : vector<8x121xf32> to vector<8x83xf32>
    %40 = vector.extract_strided_slice %13 {offsets = [0, 26], sizes = [8, 83], strides = [1, 1]} : vector<8x121xf32> to vector<8x83xf32>
    %41 = vector.extract_strided_slice %13 {offsets = [0, 27], sizes = [8, 83], strides = [1, 1]} : vector<8x121xf32> to vector<8x83xf32>
    %42 = vector.extract_strided_slice %13 {offsets = [0, 28], sizes = [8, 83], strides = [1, 1]} : vector<8x121xf32> to vector<8x83xf32>
    %43 = vector.extract_strided_slice %13 {offsets = [0, 29], sizes = [8, 83], strides = [1, 1]} : vector<8x121xf32> to vector<8x83xf32>
    %44 = vector.extract_strided_slice %13 {offsets = [0, 30], sizes = [8, 83], strides = [1, 1]} : vector<8x121xf32> to vector<8x83xf32>
    %45 = vector.extract_strided_slice %13 {offsets = [0, 31], sizes = [8, 83], strides = [1, 1]} : vector<8x121xf32> to vector<8x83xf32>
    %46 = vector.extract_strided_slice %13 {offsets = [0, 32], sizes = [8, 83], strides = [1, 1]} : vector<8x121xf32> to vector<8x83xf32>
    %47 = vector.extract_strided_slice %13 {offsets = [0, 33], sizes = [8, 83], strides = [1, 1]} : vector<8x121xf32> to vector<8x83xf32>
    %48 = vector.extract_strided_slice %13 {offsets = [0, 34], sizes = [8, 83], strides = [1, 1]} : vector<8x121xf32> to vector<8x83xf32>
    %49 = vector.extract_strided_slice %13 {offsets = [0, 35], sizes = [8, 83], strides = [1, 1]} : vector<8x121xf32> to vector<8x83xf32>
    %50 = vector.extract_strided_slice %13 {offsets = [0, 36], sizes = [8, 83], strides = [1, 1]} : vector<8x121xf32> to vector<8x83xf32>
    %51 = vector.extract_strided_slice %13 {offsets = [0, 37], sizes = [8, 83], strides = [1, 1]} : vector<8x121xf32> to vector<8x83xf32>
    %52 = vector.extract_strided_slice %13 {offsets = [0, 38], sizes = [8, 83], strides = [1, 1]} : vector<8x121xf32> to vector<8x83xf32>
    %53 = tpu.concatenate %14, %15, %16, %17, %18, %19, %20, %21, %22, %23, %24, %25, %26, %27, %28, %29 in 0 : vector<8x83xf32>, vector<8x83xf32>, vector<8x83xf32>, vector<8x83xf32>, vector<8x83xf32>, vector<8x83xf32>, vector<8x83xf32>, vector<8x83xf32>, vector<8x83xf32>, vector<8x83xf32>, vector<8x83xf32>, vector<8x83xf32>, vector<8x83xf32>, vector<8x83xf32>, vector<8x83xf32>, vector<8x83xf32> -> vector<128x83xf32>
    %54 = tpu.concatenate %30, %31, %32, %33, %34, %35, %36, %37, %38, %39, %40, %41, %42, %43, %44, %45 in 0 : vector<8x83xf32>, vector<8x83xf32>, vector<8x83xf32>, vector<8x83xf32>, vector<8x83xf32>, vector<8x83xf32>, vector<8x83xf32>, vector<8x83xf32>, vector<8x83xf32>, vector<8x83xf32>, vector<8x83xf32>, vector<8x83xf32>, vector<8x83xf32>, vector<8x83xf32>, vector<8x83xf32>, vector<8x83xf32> -> vector<128x83xf32>
    %55 = tpu.concatenate %46, %47, %48, %49, %50, %51, %52 in 0 : vector<8x83xf32>, vector<8x83xf32>, vector<8x83xf32>, vector<8x83xf32>, vector<8x83xf32>, vector<8x83xf32>, vector<8x83xf32> -> vector<56x83xf32>
    %56 = tpu.concatenate %53, %54, %55 in 0 : vector<128x83xf32>, vector<128x83xf32>, vector<56x83xf32> -> vector<312x83xf32>
    %cst_15 = arith.constant dense<0.000000e+00> : vector<24x83xf32>
    %57 = tpu.matmul %2, %56, %cst_15 {dimension_numbers = #tpu.dot_dimension_numbers<[1], [0], [0], [1], [0, 0, 1, 1], [], []>} : vector<24x312xf32>, vector<312x83xf32>, vector<24x83xf32> -> vector<24x83xf32>
    %58 = vector.extract_strided_slice %57 {offsets = [0, 0], sizes = [24, 32], strides = [1, 1]} : vector<24x83xf32> to vector<24x32xf32>
    %59 = vector.extract_strided_slice %57 {offsets = [0, 51], sizes = [24, 32], strides = [1, 1]} : vector<24x83xf32> to vector<24x32xf32>
    %60 = tpu.concatenate %58, %59 in 1 : vector<24x32xf32>, vector<24x32xf32> -> vector<24x64xf32>
    %cst_16 = arith.constant 0.000000e+00 : f32
    %61 = vector.broadcast %cst_16 : f32 to vector<24x64xf32>
    %62 = arith.maximumf %60, %61 : vector<24x64xf32>
    %cst_17 = arith.constant 0xFF800000 : f32
    %63 = vector.broadcast %cst_17 : f32 to vector<8x1xf32>
    %64 = vector.extract_strided_slice %0 {offsets = [0, 0], sizes = [8, 32], strides = [1, 1]} : vector<8x64xf32> to vector<8x32xf32>
    %65 = vector.extract_strided_slice %0 {offsets = [0, 32], sizes = [8, 32], strides = [1, 1]} : vector<8x64xf32> to vector<8x32xf32>
    %66 = tpu.concatenate %63, %64, %63, %65, %63 in 1 : vector<8x1xf32>, vector<8x32xf32>, vector<8x1xf32>, vector<8x32xf32>, vector<8x1xf32> -> vector<8x67xf32>
    %67 = vector.extract_strided_slice %66 {offsets = [0, 0], sizes = [8, 65], strides = [1, 1]} : vector<8x67xf32> to vector<8x65xf32>
    %68 = vector.extract_strided_slice %66 {offsets = [0, 1], sizes = [8, 65], strides = [1, 1]} : vector<8x67xf32> to vector<8x65xf32>
    %69 = arith.maximumf %67, %68 : vector<8x65xf32>
    %70 = vector.extract_strided_slice %66 {offsets = [0, 2], sizes = [8, 65], strides = [1, 1]} : vector<8x67xf32> to vector<8x65xf32>
    %71 = arith.maximumf %69, %70 : vector<8x65xf32>
    %72 = vector.extract_strided_slice %71 {offsets = [0, 0], sizes = [8, 32], strides = [1, 1]} : vector<8x65xf32> to vector<8x32xf32>
    %73 = vector.extract_strided_slice %71 {offsets = [0, 33], sizes = [8, 32], strides = [1, 1]} : vector<8x65xf32> to vector<8x32xf32>
    %74 = tpu.concatenate %72, %73 in 1 : vector<8x32xf32>, vector<8x32xf32> -> vector<8x64xf32>
    %cst_18 = arith.constant dense<0.000000e+00> : vector<8x64xf32>
    %75 = tpu.matmul %3, %74, %cst_18 {dimension_numbers = #tpu.dot_dimension_numbers<[1], [0], [0], [1], [0, 0, 1, 1], [], []>} : vector<8x8xf32>, vector<8x64xf32>, vector<8x64xf32> -> vector<8x64xf32>
    %76 = vector.broadcast %4 : vector<8x1xf32> to vector<8x64xf32>
    %77 = arith.addf %75, %76 : vector<8x64xf32>
    %cst_19 = arith.constant 0.000000e+00 : f32
    %78 = vector.broadcast %cst_19 : f32 to vector<8x64xf32>
    %79 = arith.maximumf %77, %78 : vector<8x64xf32>
    %80 = tpu.concatenate %62, %79 in 0 : vector<24x64xf32>, vector<8x64xf32> -> vector<32x64xf32>
    %cst_20 = arith.constant dense<0.000000e+00> : vector<32xf32>
    %81 = vector.multi_reduction <add>, %80, %cst_20 [1] : vector<32x64xf32> to vector<32xf32>
    %82 = vector.shape_cast %81 : vector<32xf32> to vector<32x1xf32>
    %cst_21 = arith.constant 6.400000e+01 : f32
    %83 = vector.broadcast %cst_21 : f32 to vector<32x1xf32>
    %84 = arith.divf %82, %83 : vector<32x1xf32>
    %85 = vector.broadcast %84 : vector<32x1xf32> to vector<32x64xf32>
    %86 = arith.subf %80, %85 : vector<32x64xf32>
    %87 = arith.mulf %86, %86 : vector<32x64xf32>
    %cst_22 = arith.constant dense<0.000000e+00> : vector<32xf32>
    %88 = vector.multi_reduction <add>, %87, %cst_22 [1] : vector<32x64xf32> to vector<32xf32>
    %89 = vector.shape_cast %88 : vector<32xf32> to vector<32x1xf32>
    %cst_23 = arith.constant 6.400000e+01 : f32
    %90 = vector.broadcast %cst_23 : f32 to vector<32x1xf32>
    %91 = arith.divf %89, %90 : vector<32x1xf32>
    %cst_24 = arith.constant 9.99999974E-6 : f32
    %92 = vector.broadcast %cst_24 : f32 to vector<32x1xf32>
    %93 = arith.addf %91, %92 : vector<32x1xf32>
    %94 = math.rsqrt %93 : vector<32x1xf32>
    %95 = arith.mulf %5, %94 : vector<32x1xf32>
    %96 = arith.mulf %84, %95 : vector<32x1xf32>
    %97 = arith.subf %6, %96 : vector<32x1xf32>
    %98 = vector.broadcast %95 : vector<32x1xf32> to vector<32x64xf32>
    %99 = arith.mulf %80, %98 : vector<32x64xf32>
    %100 = vector.broadcast %97 : vector<32x1xf32> to vector<32x64xf32>
    %101 = arith.addf %99, %100 : vector<32x64xf32>
    %cst_25 = arith.constant 0.000000e+00 : f32
    %102 = vector.broadcast %cst_25 : f32 to vector<32x64xf32>
    %103 = arith.maximumf %101, %102 : vector<32x64xf32>
    %c0_26 = arith.constant 0 : index
    %c0_27 = arith.constant 0 : index
    %104 = vector.load %arg7[%c0_26, %c0_27] : memref<32x64xf32, #tpu.memory_space<vmem>>, vector<32x64xf32>
    tpu.vector_store %arg7[%c0_26, %c0_27], %103 {strides = array<i32>} : memref<32x64xf32, #tpu.memory_space<vmem>>, vector<32x64xf32>,
    return
  }
}

</mosaic_0001>

<bundles_post_ra>
// kernel: tpu_custom_call.1
= control target key start
LH: loop header
LB: loop body
LE: loop exit
PB: predicated region body
PF: predicated region fallthrough
CT: control target
= control target key end

     0   :  { %12 = vsyncpa [#allocation3], 0  ;;  %s1199_s0 = inlined_call_operand.hbm [shape: f32[8,64], index: 0, kind: input, shape index: {}]   ;;  %s1200_s1 = inlined_call_operand.hbm [shape: f32[8,8], index: 1, kind: input, shape index: {}]   ;;  %s1201_s2 = inlined_call_operand.vmem [shape: f32[24,312], index: 2, kind: input, shape index: {}]   ;;  %s1202_s3 = inlined_call_operand.vmem [shape: f32[8,8], index: 3, kind: input, shape index: {}]   ;;  %s1203_s4 = inlined_call_operand.vmem [shape: f32[8,1], index: 4, kind: input, shape index: {}]   ;;  %s1204_s5 = inlined_call_operand.vmem [shape: f32[32,1], index: 5, kind: input, shape index: {}]   ;;  %s1205_s6 = inlined_call_operand.vmem [shape: f32[32,1], index: 6, kind: input, shape index: {}]   ;;  %s1206_s7 = inlined_call_operand.hbm [shape: f32[32,64], index: 7, kind: output, shape index: {}]  }
   0x1   :  { %13 = vsyncpa [#allocation6], 0 }
   0x2   :  { %14 = vsyncpa [#allocation4], 0  ;;  %s910_s24 = smov [#allocation2]   ;;  %s911_s26 = smov [#allocation5]  }
   0x3   :  { %s21_s25 = sshll.u32 %s910_s24, 4  ;;  %s31_s27 = sshll.u32 %s911_s26, 4  ;;  %s22_s25 = int_to_ptr.vmem [resolvable:$true] %s21_s25  ;;  %s32_s27 = int_to_ptr.vmem [resolvable:$true] %s31_s27 }
   0x4   :  { %s852_s28 = scalar_lea.vmem %s22_s25, 128  ;;  %p857_p1 = scmp.lt.s32.totalorder %s22_s25, %s22_s25 }
   0x5   :  { %p853_p0 = scmp.ne.s32.totalorder %s22_s25, %s852_s28  ;;  %p858_p2 = scmp.lt.s32.totalorder %s852_s28, %s852_s28 }
   0x7   :  { %p859_p3 = por %p858_p2, %p857_p1 }
   0x9   :  { %p860_p4 = pnand %p859_p3, %p853_p0 }
   0xb   :  { %863 = shalt.err (!%p860_p4)
}
   0xc   :  { %24 = dma.hbm_to_vmem [thread:$0]  %s1199_s0, 128, %s22_s25, [#allocation3]  }
   0xd   :  { %s872_s8 = scalar_lea.vmem %s32_s27, 128  ;;  %p877_p6 = scmp.lt.s32.totalorder %s32_s27, %s32_s27 }
   0xe   :  { %p873_p5 = scmp.ne.s32.totalorder %s32_s27, %s872_s8  ;;  %p878_p7 = scmp.lt.s32.totalorder %s872_s8, %s872_s8 }
  0x10   :  { %p879_p8 = por %p878_p7, %p877_p6 }
  0x12   :  { %p880_p9 = pnand %p879_p8, %p873_p5 }
  0x14   :  { %883 = shalt.err (!%p880_p9)
}
  0x15   :  { %34 = dma.hbm_to_vmem [thread:$0]  %s1200_s1, 128, %s32_s27, [#allocation6]  }
  0x16   :  { %904 = dma.done.wait [#allocation3], 128  }
  0x17   :  { %905 = vsyncadd [#allocation3], 4294967168 }
  0x18   :  { %906 = dma.done.wait [#allocation6], 128  }
  0x19   :  { %907 = vsyncadd [#allocation6], 4294967168  ;;  %v912_v0 = vmov 0.0   ;;  %vm913_vm0 = vmmov 0   ;;  %vm72_vm1 = vcmask 64512   ;;  %v51_v1 = vld [vmem:[#allocation2] sm:$0xff] }
  0x1a   :  { %771 = vmatprep.subr.mxu0 %v912_v0  ;;  %773 = vmatprep.mubr.msk.f32.mxu0 %vm913_vm0, %v912_v0  ;;  %v52_v2 = vld [vmem:[#allocation5] sm:$0xff]  ;;  %s914_s0 = smov 19   ;;  %s915_s1 = smov 38   ;;  %vm154_vm2 = vcmask 154624   ;;  %vm156_vm3 = vcmask 416768   ;;  %vm158_vm4 = vcmask 572416  }
  0x1b   :  { %772 = vmatpush3.msra.mxu0 %v51_v1  ;;  %vm160_vm5 = vcmask 834560   ;;  %s916_s11 = smov 115   ;;  %s917_s12 = smov 113   ;;  %v54_v25 = vld [vmem:[%s1201_s2 + $0x8] sm:$0xff]  ;;  %vm473_vm6 = vcmask 7168   ;;  %vm475_vm7 = vcmask 269312  }
  0x1c   :  { %774 = vmatmul.mubr.msk.f32.vlgmr.msra.gmra.mxu0 %vm72_vm1, %v52_v2  ;;  %776 = vmatprep.subr.mxu0 %v912_v0  ;;  %s918_s13 = smov 117   ;;  %s919_s14 = smov 114   ;;  %vm477_vm8 = vcmask 277504   ;;  %vm479_vm9 = vcmask 539648   ;;  %v53_v55 = vld [vmem:[%s1201_s2] sm:$0xff]  ;;  %v935_v58 = vmov 0  }
  0x1d   :  { %790 = vmatprep.mubr.msk.f32.mxu0 %vm913_vm0, %v912_v0  ;;  %s920_s15 = smov 119   ;;  %s921_s16 = smov 116   ;;  %351 = vmatprep.mubr.f32.mxu1 %v54_v25  ;;  %v57_v56 = vld [vmem:[%s1201_s2 + $0x20] sm:$0xff]  ;;  %v56_v61 = vld [vmem:[%s1201_s2 + $0x18] sm:$0xff]  ;;  %v55_v62 = vld [vmem:[%s1201_s2 + $0x10] sm:$0xff]  ;;  %vm277_vm10 = vcmask 457728  }
  0x1e   :  { %s922_s17 = smov 121   ;;  %s923_s18 = smov 118   ;;  %v63_v57 = vld [vmem:[%s1203_s4] sm:$0xff]  ;;  %834 = vset.pattern.permute.xlu1 %v935_v58  ;;  %v60_v63 = vld [vmem:[%s1201_s2 + $0x38] sm:$0xff]  ;;  %835 = vset.pattern.permute.xlu0 %v935_v58  ;;  %vm459_vm11 = vcmask 261120   ;;  %vm574_vm12 = vcmask 523264  }
  0x1f   :  { %s924_s19 = smov 123   ;;  %s925_s20 = smov 120  }
  0x20   :  { %s926_s21 = smov 125   ;;  %s927_s22 = smov 122  }
  0x21   :  { %s928_s23 = smov 127   ;;  %s929_s24 = smov 124  }
  0x22   :  { %s930_s25 = smov 126   ;;  %s931_s26 = smov 2  }
  0x23   :  { %s932_s27 = smov 1   ;;  %s933_s28 = smov 112  }
  0x24   :  { %s934_s29 = smov 96  }
  0xdc   :  { %v142_v3 = vpop.f32.mrf.mxu0 }
  0xdd   :  { %v146_v4 = vmax.f32 %v142_v3, 0.0  ;;  %v59_v3 = vld [vmem:[%s1201_s2 + $0x30] sm:$0xff] }
  0xde   :  { %v775_v5 = vpop.f32.mrf.mxu0 }
  0xdf   :  { %148 = vrot.lane.b32.xlu0 %v146_v4, %s914_s0  ;;  %v58_v5 = vld [vmem:[%s1201_s2 + $0x28] sm:$0xff] }
  0xe3   :  { %151 = vrot.lane.b32.xlu0 %v146_v4, %s915_s1 }
 0x151   :  { %v149_v6 = vpop.permute.xlu0 %148 }
 0x152   :  { %v155_v7 = vsel %vm154_vm2, 0.0, %v149_v6 }
 0x153   :  { %v157_v8 = vsel %vm156_vm3, %v155_v7, 0.0  ;;  %v61_v7 = vld [vmem:[%s1201_s2 + $0x40] sm:$0xff]  ;;  %s936_s2 = smov 109  }
 0x155   :  { %v152_v9 = vpop.permute.xlu0 %151 }
 0x156   :  { %v993_v10 = vsel %vm158_vm4, %v157_v8, %v152_v9  ;;  %v62_v9 = vld [vmem:[%s1202_s3] sm:$0xff] }
 0x157   :  { %v997_v11 = vsel %vm160_vm5, %v993_v10, 0.0 }
 0x158   :  { %199 = vrot.lane.b32.xlu0 %v997_v11, %s916_s11  ;;  %205 = vrot.lane.b32.xlu1 %v997_v11, %s917_s12 }
 0x15c   :  { %193 = vrot.lane.b32.xlu0 %v997_v11, %s918_s13  ;;  %202 = vrot.lane.b32.xlu1 %v997_v11, %s919_s14 }
 0x160   :  { %187 = vrot.lane.b32.xlu0 %v997_v11, %s920_s15  ;;  %196 = vrot.lane.b32.xlu1 %v997_v11, %s921_s16 }
 0x164   :  { %181 = vrot.lane.b32.xlu0 %v997_v11, %s922_s17  ;;  %190 = vrot.lane.b32.xlu1 %v997_v11, %s923_s18 }
 0x168   :  { %175 = vrot.lane.b32.xlu0 %v997_v11, %s924_s19  ;;  %184 = vrot.lane.b32.xlu1 %v997_v11, %s925_s20 }
 0x16c   :  { %169 = vrot.lane.b32.xlu0 %v997_v11, %s926_s21  ;;  %178 = vrot.lane.b32.xlu1 %v997_v11, %s927_s22 }
 0x170   :  { %163 = vrot.lane.b32.xlu0 %v997_v11, %s928_s23  ;;  %172 = vrot.lane.b32.xlu1 %v997_v11, %s929_s24 }
 0x174   :  { %166 = vrot.lane.b32.xlu1 %v997_v11, %s930_s25  ;;  %470 = vrot.lane.b32.xlu0 %v51_v1, %s931_s26 }
 0x178   :  { %467 = vrot.lane.b32.xlu1 %v51_v1, %s932_s27 }
 0x1ca   :  { %v200_v12 = vpop.permute.xlu0 %199  ;;  %v206_v13 = vpop.permute.xlu1 %205 }
 0x1cb   :  { %238 = vrot.lane.b32.xlu1 %v206_v13, %s933_s28 }
 0x1ce   :  { %v1017_v14 = vpop.permute.xlu0 %193  ;;  %v203_v15 = vpop.permute.xlu1 %202 }
 0x1cf   :  { %234 = vrot.lane.b32.xlu1 %v200_v12, %s933_s28  ;;  %236 = vrot.lane.b32.xlu0 %v203_v15, %s933_s28 }
 0x1d2   :  { %v1021_v16 = vpop.permute.xlu0 %187  ;;  %v197_v17 = vpop.permute.xlu1 %196 }
 0x1d3   :  { %230 = vrot.lane.b32.xlu1 %v1017_v14, %s933_s28  ;;  %232 = vrot.lane.b32.xlu0 %v197_v17, %s933_s28 }
 0x1d6   :  { %v191_v18 = vpop.permute.xlu1 %190  ;;  %v1029_v19 = vpop.permute.xlu0 %181 }
 0x1d7   :  { %226 = vrot.lane.b32.xlu1 %v1021_v16, %s933_s28  ;;  %228 = vrot.lane.b32.xlu0 %v191_v18, %s933_s28 }
 0x1da   :  { %v185_v20 = vpop.permute.xlu1 %184  ;;  %v1034_v21 = vpop.permute.xlu0 %175 }
 0x1db   :  { %222 = vrot.lane.b32.xlu1 %v1029_v19, %s933_s28  ;;  %224 = vrot.lane.b32.xlu0 %v185_v20, %s933_s28 }
 0x1de   :  { %v1036_v22 = vpop.permute.xlu1 %178  ;;  %v1047_v24 = vpop.permute.xlu0 %169 }
 0x1df   :  { %218 = vrot.lane.b32.xlu1 %v1034_v21, %s933_s28  ;;  %220 = vrot.lane.b32.xlu0 %v1036_v22, %s933_s28 }
 0x1e2   :  { %v1042_v23 = vpop.permute.xlu1 %172  ;;  %v1060_v28 = vpop.permute.xlu0 %163 }
 0x1e3   :  { %268 = vrot.lane.b32.xlu1 %v1036_v22, %s934_s29  ;;  %216 = vrot.lane.b32.xlu0 %v1042_v23, %s933_s28 }
 0x1e6   :  { %v1055_v26 = vpop.permute.xlu1 %166  ;;  %v471_v31 = vpop.permute.xlu0 %470 }
 0x1e7   :  { %266 = vrot.lane.b32.xlu1 %v1034_v21, %s934_s29  ;;  %214 = vrot.lane.b32.xlu0 %v1047_v24, %s933_s28 }
 0x1ea   :  { %v468_v27 = vpop.permute.xlu1 %467 }
 0x1eb   :  { %264 = vrot.lane.b32.xlu1 %v1042_v23, %s934_s29  ;;  %212 = vrot.lane.b32.xlu0 %v1055_v26, %s933_s28  ;;  %v474_v29 = vsel %vm473_vm6, -inf, %v468_v27 }
 0x1ec   :  { %v476_v30 = vsel %vm475_vm7, %v474_v29, -inf }
 0x1ed   :  { %v478_v32 = vsel %vm477_vm8, %v476_v30, %v471_v31 }
 0x1ee   :  { %v1070_v33 = vsel %vm479_vm9, %v478_v32, -inf }
 0x1ef   :  { %262 = vrot.lane.b32.xlu1 %v1047_v24, %s934_s29  ;;  %210 = vrot.lane.b32.xlu0 %v1060_v28, %s933_s28 }
 0x1f3   :  { %260 = vrot.lane.b32.xlu1 %v1055_v26, %s934_s29  ;;  %208 = vrot.lane.b32.xlu0 %v997_v11, %s933_s28 }
 0x1f7   :  { %256 = vrot.lane.b32.xlu1 %v997_v11, %s934_s29  ;;  %258 = vrot.lane.b32.xlu0 %v1060_v28, %s934_s29 }
 0x1fb   :  { %486 = vrot.lane.b32.xlu1 %v1070_v33, %s930_s25  ;;  %482 = vrot.lane.b32.xlu0 %v1070_v33, %s928_s23 }
 0x1ff   :  { %497 = vperm.xlu1 %834, %v63_v57  }
 0x23d   :  { %v239_v34 = vpop.permute.xlu1 %238 }
 0x23e   :  { %718 = vmatprep.subr.mxu1 %v239_v34 }
 0x23f   :  { %719 = vmatpush3.msra.mxu1 %v206_v13 }
 0x241   :  { %v237_v35 = vpop.permute.xlu0 %236  ;;  %v235_v36 = vpop.permute.xlu1 %234 }
 0x242   :  { %720 = vmatprep.subr.mxu1 %v237_v35 }
 0x243   :  { %721 = vmatpush3.msra.mxu1 %v203_v15 }
 0x244   :  { %722 = vmatprep.subr.mxu1 %v235_v36 }
 0x245   :  { %v233_v37 = vpop.permute.xlu0 %232  ;;  %723 = vmatpush3.msra.mxu1 %v200_v12  ;;  %v231_v38 = vpop.permute.xlu1 %230 }
 0x246   :  { %724 = vmatprep.subr.mxu1 %v233_v37 }
 0x247   :  { %725 = vmatpush3.msra.mxu1 %v197_v17 }
 0x248   :  { %726 = vmatprep.subr.mxu1 %v231_v38 }
 0x249   :  { %v229_v39 = vpop.permute.xlu0 %228  ;;  %727 = vmatpush3.msra.mxu1 %v1017_v14  ;;  %v227_v40 = vpop.permute.xlu1 %226 }
 0x24a   :  { %728 = vmatprep.subr.mxu1 %v229_v39 }
 0x24b   :  { %729 = vmatpush3.msra.mxu1 %v191_v18 }
 0x24c   :  { %730 = vmatprep.subr.mxu1 %v227_v40 }
 0x24d   :  { %v225_v41 = vpop.permute.xlu0 %224  ;;  %731 = vmatpush3.msra.mxu1 %v1021_v16  ;;  %v223_v42 = vpop.permute.xlu1 %222 }
 0x24e   :  { %732 = vmatprep.subr.mxu1 %v225_v41 }
 0x24f   :  { %733 = vmatpush3.msra.mxu1 %v185_v20 }
 0x250   :  { %734 = vmatprep.subr.mxu1 %v223_v42 }
 0x251   :  { %v221_v43 = vpop.permute.xlu0 %220  ;;  %735 = vmatpush3.msra.mxu1 %v1029_v19  ;;  %v219_v44 = vpop.permute.xlu1 %218 }
 0x252   :  { %736 = vmatprep.subr.mxu1 %v221_v43 }
 0x253   :  { %737 = vmatpush3.msra.mxu1 %v1036_v22 }
 0x254   :  { %738 = vmatprep.subr.mxu1 %v219_v44 }
 0x255   :  { %v217_v45 = vpop.permute.xlu0 %216  ;;  %739 = vmatpush3.msra.mxu1 %v1034_v21  ;;  %v269_v46 = vpop.permute.xlu1 %268 }
 0x256   :  { %740 = vmatprep.subr.mxu1 %v217_v45  ;;  %777 = vmatpush3.msra.mxu0 %v269_v46 }
 0x257   :  { %741 = vmatpush3.msra.mxu1 %v1042_v23  ;;  %778 = vmatprep.subr.mxu0 %v912_v0 }
 0x259   :  { %v215_v47 = vpop.permute.xlu0 %214  ;;  %v267_v48 = vpop.permute.xlu1 %266 }
 0x25a   :  { %742 = vmatprep.subr.mxu1 %v215_v47  ;;  %779 = vmatpush3.msra.mxu0 %v267_v48 }
 0x25b   :  { %743 = vmatpush3.msra.mxu1 %v1047_v24  ;;  %780 = vmatprep.subr.mxu0 %v912_v0 }
 0x25d   :  { %v213_v49 = vpop.permute.xlu0 %212  ;;  %v265_v50 = vpop.permute.xlu1 %264 }
 0x25e   :  { %744 = vmatprep.subr.mxu1 %v213_v49  ;;  %781 = vmatpush3.msra.mxu0 %v265_v50 }
 0x25f   :  { %745 = vmatpush3.msra.mxu1 %v1055_v26  ;;  %782 = vmatprep.subr.mxu0 %v912_v0 }
 0x261   :  { %v211_v51 = vpop.permute.xlu0 %210  ;;  %v263_v52 = vpop.permute.xlu1 %262 }
 0x262   :  { %746 = vmatprep.subr.mxu1 %v211_v51  ;;  %783 = vmatpush3.msra.mxu0 %v263_v52 }
 0x263   :  { %747 = vmatpush3.msra.mxu1 %v1060_v28  ;;  %784 = vmatprep.subr.mxu0 %v912_v0 }
 0x265   :  { %v209_v53 = vpop.permute.xlu0 %208  ;;  %v261_v54 = vpop.permute.xlu1 %260 }
 0x266   :  { %748 = vmatprep.subr.mxu1 %v209_v53  ;;  %785 = vmatpush3.msra.mxu0 %v261_v54 }
 0x267   :  { %749 = vmatpush3.msk.msra.mxu1 %vm160_vm5, %v993_v10  ;;  %786 = vmatprep.subr.mxu0 %v912_v0 }
 0x268   :  { %352 = vmatmul.mubr.f32.vlgmr.msra.gmra.mxu1 %v53_v55 }
 0x269   :  { %v259_v59 = vpop.permute.xlu0 %258  ;;  %v257_v60 = vpop.permute.xlu1 %256  ;;  %356 = vmatprep.mubr.f32.mxu1 %v57_v56 }
 0x26a   :  { %787 = vmatpush3.msra.mxu0 %v259_v59 }
 0x26b   :  { %788 = vmatprep.subr.mxu0 %v912_v0 }
 0x26c   :  { %789 = vmatpush3.msra.mxu0 %v257_v60  ;;  %357 = vmatmul.mubr.f32.gmra.mxu1 %v56_v61 }
 0x26d   :  { %v483_v1 = vpop.permute.xlu0 %482  ;;  %791 = vmatmul.mubr.msk.f32.vlgmr.msra.gmra.mxu0 %vm277_vm10, %v55_v62  ;;  %v487_v2 = vpop.permute.xlu1 %486  ;;  %361 = vmatprep.mubr.f32.mxu1 %v60_v63 }
 0x26e   :  { %v485_v4 = vmax.f32 %v1070_v33, %v483_v1  ;;  %793 = vmatprep.mubr.msk.f32.mxu0 %vm913_vm0, %v912_v0  ;;  %799 = vmatprep.subr.mxu0 %v912_v0 }
 0x270   :  { %v489_v6 = vmax.f32 %v485_v4, %v487_v2  ;;  %362 = vmatmul.mubr.f32.gmra.mxu1 %v59_v3 }
 0x271   :  { %794 = vmatmul.mubr.msk.f32.gmra.mxu0 %vm277_vm10, %v58_v5 }
 0x272   :  { %491 = vrot.lane.b32.xlu0 %v489_v6, %s928_s23  ;;  %796 = vmatprep.mubr.msk.f32.mxu0 %vm913_vm0, %v912_v0 }
 0x275   :  { %797 = vmatmul.mubr.msk.f32.gmra.mxu0 %vm277_vm10, %v61_v7 }
 0x276   :  { %801 = vmatprep.mubr.msk.f32.mxu0 %vm913_vm0, %v912_v0 }
 0x27a   :  { %v498_v28 = vpop.permute.xlu1 %497 }
 0x2e4   :  { %v492_v8 = vpop.permute.xlu0 %491 }
 0x2e5   :  { %v494_v10 = vsel %vm459_vm11, %v489_v6, %v492_v8 }
 0x2e6   :  { %800 = vmatpush3.msra.mxu0 %v494_v10 }
 0x2e7   :  { %802 = vmatmul.mubr.msk.f32.vlgmr.msra.gmra.mxu0 %vm72_vm1, %v62_v9 }
 0x328   :  { %v750_v11 = vpop.f32.mrf.mxu1 }
 0x32a   :  { %v751_v12 = vpop.f32.mrf.mxu1 }
 0x32b   :  { %v752_v13 = vadd.f32 %v751_v12, %v750_v11 }
 0x32c   :  { %v753_v14 = vpop.f32.mrf.mxu1 }
 0x32d   :  { %v433_v15 = vpop.f32.mrf.mxu0 }
 0x32e   :  { %v434_v16 = vadd.f32 %v752_v13, %v433_v15  ;;  %v754_v17 = vpop.f32.mrf.mxu1 }
 0x32f   :  { %v755_v18 = vadd.f32 %v754_v17, %v753_v14  ;;  %v792_v0 = vpop.f32.mrf.mxu0  ;;  %v64_v14 = vld [vmem:[%s1204_s5] sm:$0xff] }
 0x330   :  { %450 = vrot.lane.b32.xlu0 %v434_v16, %s936_s2  ;;  %v756_v19 = vpop.f32.mrf.mxu1 }
 0x331   :  { %v438_v20 = vpop.f32.mrf.mxu0 }
 0x332   :  { %v439_v21 = vadd.f32 %v755_v18, %v438_v20  ;;  %v757_v22 = vpop.f32.mrf.mxu1  ;;  %v67_v18 = vld [vmem:[%s1204_s5 + $0x18] sm:$0xff] }
 0x333   :  { %v758_v23 = vadd.f32 %v757_v22, %v756_v19  ;;  %v795_v24 = vpop.f32.mrf.mxu0 }
 0x334   :  { %452 = vrot.lane.b32.xlu1 %v439_v21, %s936_s2  ;;  %v68_v24 = vld [vmem:[%s1205_s6] sm:$0xff] }
 0x335   :  { %v443_v25 = vpop.f32.mrf.mxu0 }
 0x336   :  { %v444_v26 = vadd.f32 %v758_v23, %v443_v25 }
 0x337   :  { %v798_v27 = vpop.f32.mrf.mxu0 }
 0x338   :  { %454 = vrot.lane.b32.xlu0 %v444_v26, %s936_s2  ;;  %v66_v27 = vld [vmem:[%s1204_s5 + $0x10] sm:$0xff] }
 0x3a2   :  { %v451_v29 = vpop.permute.xlu0 %450 }
 0x3a3   :  { %v460_v30 = vsel %vm459_vm11, %v434_v16, %v451_v29 }
 0x3a4   :  { %v1138_v31 = vmax.f32 %v460_v30, 0.0  ;;  %v69_v30 = vld [vmem:[%s1205_s6 + $0x8] sm:$0xff] }
 0x3a6   :  { %v453_v32 = vpop.permute.xlu1 %452  ;;  %v575_v33 = vsel %vm574_vm12, %v1138_v31, 0.0 }
 0x3a7   :  { %v461_v34 = vsel %vm459_vm11, %v439_v21, %v453_v32  ;;  %576 = vadd.xlane.f32.xlu1 %v575_v33  ;;  %v569_v35 = vpop.f32.mrf.mxu0  ;;  %v65_v21 = vld [vmem:[%s1204_s5 + $0x8] sm:$0xff]  ;;  %s937_s5 = smov [#allocation7]  }
 0x3a8   :  { %v1143_v36 = vmax.f32 %v461_v34, 0.0  ;;  %v570_v37 = vadd.f32 %v569_v35, %v498_v28  ;;  %v70_v34 = vld [vmem:[%s1205_s6 + $0x10] sm:$0xff] }
 0x3a9   :  { %v803_v38 = vpop.f32.mrf.mxu0 }
 0x3aa   :  { %v1145_v39 = vmax.f32 %v570_v37, 0.0  ;;  %v455_v40 = vpop.permute.xlu0 %454  ;;  %v578_v41 = vsel %vm574_vm12, %v1143_v36, 0.0  ;;  %v71_v38 = vld [vmem:[%s1205_s6 + $0x18] sm:$0xff]  ;;  %s697_s6 = sshll.u32 %s937_s5, 4  ;;  %s698_s6 = int_to_ptr.vmem [resolvable:$true] %s697_s6 }
 0x3ab   :  { %v462_v42 = vsel %vm459_vm11, %v444_v26, %v455_v40  ;;  %579 = vadd.xlane.f32.xlu0 %v578_v41  ;;  %s884_s16 = scalar_lea.vmem %s698_s6, 512  ;;  %p889_p11 = scmp.lt.s32.totalorder %s698_s6, %s698_s6 }
 0x3ac   :  { %v1150_v43 = vmax.f32 %v462_v42, 0.0  ;;  %v584_v44 = vsel %vm574_vm12, %v1145_v39, 0.0  ;;  %p885_p10 = scmp.ne.s32.totalorder %s698_s6, %s884_s16  ;;  %p890_p12 = scmp.lt.s32.totalorder %s884_s16, %s884_s16 }
 0x3ad   :  { %585 = vadd.xlane.f32.xlu1 %v584_v44 }
 0x3ae   :  { %v581_v45 = vsel %vm574_vm12, %v1150_v43, 0.0  ;;  %p891_p13 = por %p890_p12, %p889_p11 }
 0x3af   :  { %582 = vadd.xlane.f32.xlu0 %v581_v45 }
 0x3b0   :  { %p892_p0 = pnand %p891_p13, %p885_p10 }
 0x430   :  { %v577_v46 = vpop.xlane.xlu1 %576 }
 0x431   :  { %v588_v47 = vmul.f32 0.015625, %v577_v46 }
 0x433   :  { %v592_v48 = vsub.f32 %v1138_v31, %v588_v47 }
 0x434   :  { %v580_v49 = vpop.xlane.xlu0 %579 }
 0x435   :  { %v589_v50 = vmul.f32 0.015625, %v580_v49  ;;  %v596_v51 = vmul.f32 %v592_v48, %v592_v48 }
 0x436   :  { %v586_v52 = vpop.xlane.xlu1 %585 }
 0x437   :  { %v593_v53 = vsub.f32 %v1143_v36, %v589_v50  ;;  %v591_v54 = vmul.f32 0.015625, %v586_v52  ;;  %v600_v55 = vsel %vm574_vm12, %v596_v51, 0.0 }
 0x438   :  { %601 = vadd.xlane.f32.xlu0 %v600_v55  ;;  %v583_v56 = vpop.xlane.xlu0 %582 }
 0x439   :  { %v595_v57 = vsub.f32 %v1145_v39, %v591_v54  ;;  %v590_v58 = vmul.f32 0.015625, %v583_v56  ;;  %v597_v59 = vmul.f32 %v593_v53, %v593_v53 }
 0x43b   :  { %v594_v60 = vsub.f32 %v1150_v43, %v590_v58  ;;  %v603_v61 = vsel %vm574_vm12, %v597_v59, 0.0  ;;  %v599_v62 = vmul.f32 %v595_v57, %v595_v57 }
 0x43c   :  { %604 = vadd.xlane.f32.xlu1 %v603_v61 }
 0x43d   :  { %v598_v63 = vmul.f32 %v594_v60, %v594_v60  ;;  %v609_v2 = vsel %vm574_vm12, %v599_v62, 0.0 }
 0x43f   :  { %v606_v1 = vsel %vm574_vm12, %v598_v63, 0.0 }
 0x440   :  { %607 = vadd.xlane.f32.xlu0 %v606_v1  ;;  %610 = vadd.xlane.f32.xlu1 %v609_v2 }
 0x4c1   :  { %v602_v3 = vpop.xlane.xlu0 %601 }
 0x4c2   :  { %v612_v4 = vmul.f32 0.015625, %v602_v3 }
 0x4c4   :  { %v616_v5 = vadd.f32 1e-05, %v612_v4 }
 0x4c5   :  { %v605_v6 = vpop.xlane.xlu1 %604 }
 0x4c6   :  { %836 = vrsqrt.f32 %v616_v5  ;;  %v613_v7 = vmul.f32 0.015625, %v605_v6 }
 0x4c8   :  { %v617_v11 = vadd.f32 1e-05, %v613_v7 }
 0x4c9   :  { %v611_v8 = vpop.xlane.xlu1 %610  ;;  %v608_v12 = vpop.xlane.xlu0 %607 }
 0x4ca   :  { %v615_v9 = vmul.f32 0.015625, %v611_v8  ;;  %v614_v13 = vmul.f32 0.015625, %v608_v12 }
 0x4cc   :  { %v619_v10 = vadd.f32 1e-05, %v615_v9  ;;  %v618_v17 = vadd.f32 1e-05, %v614_v13 }
 0x4ce   :  { %838 = vrsqrt.f32 %v619_v10 }
 0x4cf   :  { %840 = vrsqrt.f32 %v617_v11 }
 0x4d0   :  { %842 = vrsqrt.f32 %v618_v17 }
 0x4d3   :  { %v837_v15 = vpop.eup %836 }
 0x4d4   :  { %v624_v16 = vmul.f32 %v837_v15, %v64_v14 }
 0x4d6   :  { %638 = vperm.xlu0 %835, %v624_v16   ;;  %v628_v23 = vmul.f32 %v624_v16, %v588_v47 }
 0x4d8   :  { %v632_v25 = vsub.f32 %v68_v24, %v628_v23 }
 0x4db   :  { %v839_v0 = vpop.eup %838 }
 0x4dc   :  { %v627_v19 = vmul.f32 %v839_v0, %v67_v18  ;;  %v841_v20 = vpop.eup %840 }
 0x4dd   :  { %v625_v22 = vmul.f32 %v841_v20, %v65_v21  ;;  %v843_v26 = vpop.eup %842 }
 0x4de   :  { %653 = vperm.xlu1 %834, %v627_v19   ;;  %v626_v28 = vmul.f32 %v843_v26, %v66_v27  ;;  %v631_v37 = vmul.f32 %v627_v19, %v591_v54 }
 0x4df   :  { %v629_v29 = vmul.f32 %v625_v22, %v589_v50 }
 0x4e0   :  { %v630_v33 = vmul.f32 %v626_v28, %v590_v58  ;;  %v635_v40 = vsub.f32 %v71_v38, %v631_v37 }
 0x4e1   :  { %v633_v32 = vsub.f32 %v69_v30, %v629_v29 }
 0x4e2   :  { %643 = vperm.xlu1 %834, %v625_v22   ;;  %v634_v35 = vsub.f32 %v70_v34, %v630_v33 }
 0x4e6   :  { %662 = vperm.xlu1 %834, %v632_v25  }
 0x4ea   :  { %648 = vperm.xlu1 %834, %v626_v28  }
 0x4ee   :  { %667 = vperm.xlu1 %834, %v633_v32  }
 0x4f2   :  { %672 = vperm.xlu1 %834, %v634_v35  }
 0x4f6   :  { %677 = vperm.xlu1 %834, %v635_v40  }
 0x551   :  { %v639_v42 = vpop.permute.xlu0 %638 }
 0x552   :  { %v656_v45 = vmul.f32 %v639_v42, %v1138_v31 }
 0x559   :  { %v654_v41 = vpop.permute.xlu1 %653 }
 0x55a   :  { %v659_v57 = vmul.f32 %v654_v41, %v1145_v39 }
 0x55d   :  { %v644_v44 = vpop.permute.xlu1 %643 }
 0x55e   :  { %v657_v50 = vmul.f32 %v644_v44, %v1143_v36 }
 0x561   :  { %v663_v46 = vpop.permute.xlu1 %662 }
 0x562   :  { %v680_v47 = vadd.f32 %v663_v46, %v656_v45 }
 0x564   :  { %v684_v48 = vmax.f32 %v680_v47, 0.0 }
 0x565   :  { %v649_v49 = vpop.permute.xlu1 %648 }
 0x566   :  { %688 = vst.msk [vmem:[#allocation7] sm:$0xff] %vm574_vm12, %v684_v48  ;;  %v658_v53 = vmul.f32 %v649_v49, %v1150_v43 }
 0x569   :  { %v668_v51 = vpop.permute.xlu1 %667 }
 0x56a   :  { %v681_v52 = vadd.f32 %v668_v51, %v657_v50 }
 0x56c   :  { %v685_v54 = vmax.f32 %v681_v52, 0.0 }
 0x56d   :  { %v673_v55 = vpop.permute.xlu1 %672 }
 0x56e   :  { %689 = vst.msk [vmem:[#allocation7 + $0x8] sm:$0xff] %vm574_vm12, %v685_v54  ;;  %v682_v56 = vadd.f32 %v673_v55, %v658_v53 }
 0x570   :  { %v686_v31 = vmax.f32 %v682_v56, 0.0 }
 0x571   :  { %v678_v58 = vpop.permute.xlu1 %677 }
 0x572   :  { %690 = vst.msk [vmem:[#allocation7 + $0x10] sm:$0xff] %vm574_vm12, %v686_v31  ;;  %v683_v59 = vadd.f32 %v678_v58, %v659_v57 }
 0x574   :  { %v687_v36 = vmax.f32 %v683_v59, 0.0 }
 0x576   :  { %691 = vst.msk [vmem:[#allocation7 + $0x18] sm:$0xff] %vm574_vm12, %v687_v36 }
 0x577   :  { %895 = shalt.err (!%p892_p0)
}
 0x578   :  { %s938_s17 = smov 128   ;;  %s939_s18 = smov 8  }
 0x579   :  { %703 = dma.vmem_to_hbm [thread:$0]  %s698_s6, 512, %s1206_s7, [#allocation4], %s938_s17, %s938_s17, %s939_s18  }
 0x57a   :  { %908 = dma.done.wait [#allocation4], 512  }
 0x57b   :  { %909 = vsyncadd [#allocation4], 4294966784 }
 0x57c   :  { %707 = vsyncpa [#allocation3], 1 }
 0x57d   :  { %708 = vsyncpa [#allocation6], 1 }
 0x57e   :  { %709 = vsyncpa [#allocation4], 1 }

</bundles_post_ra>
